<compile_context>
chip_gen: v7x
topology: tpu7x:2x2x1
jax: 0.10.0
libtpu: 0.0.40
codegen_flags: <defaults>
</compile_context>

<pallas_src>
import functools

import jax
import jax.numpy as jnp
from jax import lax
from jax.experimental import pallas as pl
from jax.experimental.pallas import tpu as pltpu


def _round_up(x: int, m: int) -> int:
    return (x + m - 1) // m * m


def _cdiv(a: int, b: int) -> int:
    return (a + b - 1) // b


def _make_sums_kernel(tile_rows: int, tile_cols: int, total_cols: int):
    """Streaming reduction kernel producing per-row [S1, S2, S3]."""
    n_chunks = tile_cols // 128
    n_row_groups = tile_rows // 8
    rem = total_cols % tile_cols          # valid columns in the ragged last col tile
    needs_mask = rem != 0

    def kernel(p_ref, l_ref, out_ref, s1_ref, s2_ref, s3_ref):
        k = pl.program_id(1)
        last_k = pl.num_programs(1) - 1

        @pl.when(k == 0)
        def _init():
            s1_ref[...] = jnp.zeros_like(s1_ref)
            s2_ref[...] = jnp.zeros_like(s2_ref)
            s3_ref[...] = jnp.zeros_like(s3_ref)

        def accumulate(masked):
            # Lane index of an (8, 128) chunk; only needed for the ragged tail.
            lane = lax.broadcasted_iota(jnp.int32, (8, 128), 1) if masked else None

            def row_group(g, carry):
                r0 = pl.multiple_of(g * 8, 8)
                # Lane-dense running sums: 3 vregs total, so they stay in
                # registers across the whole unrolled chunk loop.
                s1 = jnp.zeros((8, 128), jnp.float32)
                s2 = jnp.zeros((8, 128), jnp.float32)
                s3 = jnp.zeros((8, 128), jnp.float32)
                for j in range(n_chunks):
                    pj = p_ref[pl.ds(r0, 8), pl.ds(j * 128, 128)].astype(jnp.float32)
                    lj = l_ref[pl.ds(r0, 8), pl.ds(j * 128, 128)].astype(jnp.float32)
                    if masked:
                        valid = (lane + (j * 128)) < rem
                        pj = jnp.where(valid, pj, 0.0)
                        lj = jnp.where(valid, lj, 0.0)
                    s = pj + lj
                    s1 = s1 + s
                    s2 = s2 + pj * lj
                    s3 = s3 + s * s
                # One VMEM read-modify-write per row group per tile.
                s1_ref[pl.ds(r0, 8), :] += s1
                s2_ref[pl.ds(r0, 8), :] += s2
                s3_ref[pl.ds(r0, 8), :] += s3
                return carry

            lax.fori_loop(0, n_row_groups, row_group, None)

        if needs_mask:
            @pl.when(k != last_k)
            def _bulk():
                accumulate(False)

            @pl.when(k == last_k)
            def _tail():
                accumulate(True)
        else:
            accumulate(False)

        @pl.when(k == last_k)
        def _finalize():
            # Cross-lane reduce deferred to once per row stripe.
            out_ref[:, 0:1] = jnp.sum(s1_ref[...], axis=-1, keepdims=True)
            out_ref[:, 1:2] = jnp.sum(s2_ref[...], axis=-1, keepdims=True)
            out_ref[:, 2:3] = jnp.sum(s3_ref[...], axis=-1, keepdims=True)

    return kernel


@functools.partial(jax.jit,
                   static_argnames=("depth", "smooth", "tile_rows", "tile_cols"))
def ftnmt_loss(preds, labels, depth: int = 0, smooth: float = 1.0e-5,
               tile_rows=None, tile_cols=None):
    """Fractal Tanimoto loss. preds/labels: NCHW arrays with values in [0, 1]."""
    assert preds.shape == labels.shape
    B, C, H, W = preds.shape
    R, N = B * C, H * W

    if depth == 0:
        eff_depth, scale = 1, 1.0
    else:
        eff_depth, scale = depth, 1.0 / depth

    # Split the reduction axis into G groups when B*C is tiny, so the "parallel"
    # row axis always exposes work for both v7x TensorCores.  Group partial
    # sums are recombined exactly in the JAX finalize below.
    G = 1
    while (R * G < 16) and (N % (2 * G) == 0) and (N // (2 * G) >= 4096):
        G *= 2
    rows, n_cols = R * G, N // G

    p2 = preds.reshape(rows, n_cols)   # contiguous reshape: no copy
    l2 = labels.reshape(rows, n_cols)

    # Corner-case padding only (rare and cheap).  Ragged H*W — the expensive
    # case — is handled by in-kernel masking, never by a wrapper copy.
    rpad = _round_up(rows, 8) - rows                # row count not multiple of 8
    cpad = (128 - n_cols) if n_cols < 128 else 0    # fewer than 128 columns
    if rpad or cpad:
        p2 = jnp.pad(p2, ((0, rpad), (0, cpad)))
        l2 = jnp.pad(l2, ((0, rpad), (0, cpad)))
    rows_p, cols_p = rows + rpad, n_cols + cpad

    # ---- tile sizing --------------------------------------------------------
    if tile_rows is None:
        TR = min(128, rows_p)
        if _cdiv(rows_p, TR) == 1 and rows_p >= 16:
            TR = _round_up(_cdiv(rows_p, 2), 8)     # guarantee >= 2 row tiles
    else:
        assert tile_rows % 8 == 0 and tile_rows <= rows_p
        TR = tile_rows
    if tile_cols is None:
        itemsize = jnp.dtype(preds.dtype).itemsize
        target_tn = (4 * 1024 * 1024) // (TR * itemsize)   # ~4 MiB per input block
        TN = max(128, min(target_tn, 16384, cols_p) // 128 * 128)
    else:
        assert tile_cols % 128 == 0 and tile_cols <= cols_p
        TN = tile_cols

    grid = (_cdiv(rows_p, TR), _cdiv(cols_p, TN))
    kernel = _make_sums_kernel(TR, TN, cols_p)

    sums = pl.pallas_call(
        kernel,
        out_shape=jax.ShapeDtypeStruct((rows_p, 3), jnp.float32),
        grid_spec=pltpu.PrefetchScalarGridSpec(
            num_scalar_prefetch=0,
            grid=grid,
            in_specs=[
                pl.BlockSpec((TR, TN), lambda i, k: (i, k)),
                pl.BlockSpec((TR, TN), lambda i, k: (i, k)),
            ],
            out_specs=pl.BlockSpec((TR, 3), lambda i, k: (i, 0)),
            scratch_shapes=[pltpu.VMEM((TR, 128), jnp.float32) for _ in range(3)],
        ),
        compiler_params=pltpu.CompilerParams(
            dimension_semantics=("parallel", "arbitrary"),
            vmem_limit_bytes=32 * 1024 * 1024,   # raises v5e's 16 MiB default
        ),
    )(p2, l2)

    # ---- tiny finalize in plain JAX (O(B*C) work) ---------------------------
    s = sums[:rows].reshape(R, G, 3).sum(axis=1)
    s1, spl, s3 = s[:, 0], s[:, 1], s[:, 2]   # sum(p+l), sum(p*l), sum((p+l)^2)
    sq = s3 - 2.0 * spl                        # sum(p*p) + sum(l*l)
    n = jnp.float32(N)

    def base(tpl, tq):
        num = tpl + smooth
        denom = jnp.zeros_like(tpl)
        for d in range(eff_depth):             # small static depth -> unrolled
            a = 2.0 ** d
            b = -(2.0 * a - 1.0)
            denom = denom + 1.0 / (a * tq + b * tpl + smooth)
        return num * denom * scale

    # Complement pass (1-p, 1-l) from the same sums:
    #   sum((1-p)(1-l))        = N - S1 + sum(p*l)
    #   sum((1-p)^2 + (1-l)^2) = 2N - 2*S1 + sq
    sim = 0.5 * (base(spl, sq) + base(n - s1 + spl, 2.0 * n - 2.0 * s1 + sq))
    return jnp.mean(1.0 - sim)


def ftnmt_loss_ref(preds, labels, depth: int = 0, smooth: float = 1.0e-5):
    """Pure-JAX reference mirroring the PyTorch module (for verification)."""
    if depth == 0:
        eff_depth, scale = 1, 1.0
    else:
        eff_depth, scale = depth, 1.0 / depth

    preds = preds.astype(jnp.float32)
    labels = labels.astype(jnp.float32)

    def inner(a, b):
        return jnp.sum(a * b, axis=(2, 3), keepdims=True)

    def base(p, l):
        tpl = inner(p, l)
        tpp = inner(p, p)
        tll = inner(l, l)
        num = tpl + smooth
        denum = 0.0
        for d in range(eff_depth):
            a = 2.0 ** d
            b = -(2.0 * a - 1.0)
            denum = denum + 1.0 / (a * (tpp + tll) + b * tpl + smooth)
        return num * denum * scale

    sim = 0.5 * (base(preds, labels) + base(1.0 - preds, 1.0 - labels))
    return jnp.mean(1.0 - sim)


if __name__ == "__main__":
    key = jax.random.PRNGKey(0)
    ks = jax.random.split(key, 12)

    def make_inputs(shape, kp, kl, dtype=jnp.float32):
        preds = jax.nn.sigmoid(jax.random.normal(kp, shape, dtype=jnp.float32))
        labels = (jax.random.uniform(kl, shape) > 0.5).astype(jnp.float32)
        return preds.astype(dtype), labels.astype(dtype)

    def check(name, preds, labels, depth, rtol=1e-4, atol=1e-6, **kw):
        out = jax.block_until_ready(ftnmt_loss(preds, labels, depth=depth, **kw))
        ref = ftnmt_loss_ref(preds, labels, depth=depth)
        assert jnp.allclose(out, ref, rtol=rtol, atol=atol), (name, out, ref)

    # 1) Aligned shapes, depth=0 (single tile in both grid axes).
    p1, l1 = make_inputs((2, 4, 16, 16), ks[0], ks[1])
    check("aligned_d0", p1, l1, depth=0)

    # 2) Same inputs, depth>0 (exercises the fractal depth loop).
    check("aligned_d5", p1, l1, depth=5)

    # 3) Ragged spatial dims + row count not a multiple of 8 (tail mask path).
    p3, l3 = make_inputs((2, 3, 17, 9), ks[2], ks[3])
    check("ragged", p3, l3, depth=0)

    # 4) Forced small tiles: multiple row tiles, row groups, column tiles and a
    #    masked ragged last column tile.
    p4, l4 = make_inputs((4, 8, 23, 13), ks[4], ks[5])
    check("multi_tile", p4, l4, depth=3, tile_rows=16, tile_cols=128)

    # 5) Few rows with a larger even reduction axis: group-split (G>1) path.
    p5, l5 = make_inputs((1, 4, 64, 128), ks[6], ks[7])
    check("group_split", p5, l5, depth=2)

    # 6) Partial trailing row tile + fewer than 128 columns (corner padding).
    p6, l6 = make_inputs((3, 8, 10, 10), ks[8], ks[9])
    check("row_tail", p6, l6, depth=0, tile_rows=16, tile_cols=128)

    # 7) bf16 inputs (native-dtype HBM boundary).
    p7, l7 = make_inputs((2, 4, 16, 16), ks[10], ks[11], dtype=jnp.bfloat16)
    check("bf16", p7, l7, depth=0, rtol=1e-3, atol=1e-5)

    print("KERNEL_OK")
</pallas_src>

<mosaic_0001>
module attributes {stable_mosaic.version = 11 : i64} {
  func.func @kernel(%arg0: i32, %arg1: i32, %arg2: memref<8x256xf32, #tpu.memory_space<vmem>>, %arg3: memref<8x256xf32, #tpu.memory_space<vmem>>, %arg4: memref<8x3xf32, #tpu.memory_space<vmem>>, %arg5: memref<8x128xf32, #tpu.memory_space<vmem>>, %arg6: memref<8x128xf32, #tpu.memory_space<vmem>>, %arg7: memref<8x128xf32, #tpu.memory_space<vmem>>) attributes {dimension_semantics = [#tpu.dimension_semantics<parallel>, #tpu.dimension_semantics<arbitrary>], iteration_bounds = array<i64: 1, 1>, scalar_prefetch = 0 : i64, scratch_operands = 3 : i64, tpu.core_type = #tpu.core_type<tc>, window_params = [{transform_indices = @transform_0, window_bounds = array<i64: 8, 256>}, {transform_indices = @transform_1, window_bounds = array<i64: 8, 256>}, {transform_indices = @transform_2, window_bounds = array<i64: 8, 3>}]} {
    %c0_i32 = arith.constant 0 : i32
    %0 = arith.cmpi eq, %arg1, %c0_i32 : i32
    %1 = arith.extui %0 : i1 to i32
    %c0_i32_0 = arith.constant 0 : i32
    %2 = arith.cmpi ne, %1, %c0_i32_0 : i32
    scf.if %2 {
      %cst_14 = arith.constant 0.000000e+00 : f32
      %46 = vector.broadcast %cst_14 : f32 to vector<8x128xf32>
      %c0_15 = arith.constant 0 : index
      %c0_16 = arith.constant 0 : index
      %47 = vector.load %arg5[%c0_15, %c0_16] : memref<8x128xf32, #tpu.memory_space<vmem>>, vector<8x128xf32>
      tpu.vector_store %arg5[%c0_15, %c0_16], %46 {strides = array<i32>} : memref<8x128xf32, #tpu.memory_space<vmem>>, vector<8x128xf32>,
      %cst_17 = arith.constant 0.000000e+00 : f32
      %48 = vector.broadcast %cst_17 : f32 to vector<8x128xf32>
      %c0_18 = arith.constant 0 : index
      %c0_19 = arith.constant 0 : index
      %49 = vector.load %arg6[%c0_18, %c0_19] : memref<8x128xf32, #tpu.memory_space<vmem>>, vector<8x128xf32>
      tpu.vector_store %arg6[%c0_18, %c0_19], %48 {strides = array<i32>} : memref<8x128xf32, #tpu.memory_space<vmem>>, vector<8x128xf32>,
      %cst_20 = arith.constant 0.000000e+00 : f32
      %50 = vector.broadcast %cst_20 : f32 to vector<8x128xf32>
      %c0_21 = arith.constant 0 : index
      %c0_22 = arith.constant 0 : index
      %51 = vector.load %arg7[%c0_21, %c0_22] : memref<8x128xf32, #tpu.memory_space<vmem>>, vector<8x128xf32>
      tpu.vector_store %arg7[%c0_21, %c0_22], %50 {strides = array<i32>} : memref<8x128xf32, #tpu.memory_space<vmem>>, vector<8x128xf32>,
    } else {
    }
    %c0_i32_1 = arith.constant 0 : i32
    %c8_i32 = arith.constant 8 : i32
    %3 = arith.muli %c0_i32_1, %c8_i32 : i32
    %4 = tpu.assume_multiple %3, 8 : i32
    %cst = arith.constant 0.000000e+00 : f32
    %5 = vector.broadcast %cst : f32 to vector<8x128xf32>
    %cst_2 = arith.constant 0.000000e+00 : f32
    %6 = vector.broadcast %cst_2 : f32 to vector<8x128xf32>
    %cst_3 = arith.constant 0.000000e+00 : f32
    %7 = vector.broadcast %cst_3 : f32 to vector<8x128xf32>
    %8 = arith.index_cast %4 : i32 to index
    %c0 = arith.constant 0 : index
    %9 = vector.load %arg2[%8, %c0] : memref<8x256xf32, #tpu.memory_space<vmem>>, vector<8x128xf32>
    %10 = arith.index_cast %4 : i32 to index
    %c0_4 = arith.constant 0 : index
    %11 = vector.load %arg3[%10, %c0_4] : memref<8x256xf32, #tpu.memory_space<vmem>>, vector<8x128xf32>
    %12 = arith.addf %9, %11 : vector<8x128xf32>
    %13 = arith.addf %5, %12 : vector<8x128xf32>
    %14 = arith.mulf %9, %11 : vector<8x128xf32>
    %15 = arith.addf %6, %14 : vector<8x128xf32>
    %16 = arith.mulf %12, %12 : vector<8x128xf32>
    %17 = arith.addf %7, %16 : vector<8x128xf32>
    %18 = arith.index_cast %4 : i32 to index
    %c128 = arith.constant 128 : index
    %19 = vector.load %arg2[%18, %c128] : memref<8x256xf32, #tpu.memory_space<vmem>>, vector<8x128xf32>
    %20 = arith.index_cast %4 : i32 to index
    %c128_5 = arith.constant 128 : index
    %21 = vector.load %arg3[%20, %c128_5] : memref<8x256xf32, #tpu.memory_space<vmem>>, vector<8x128xf32>
    %22 = arith.addf %19, %21 : vector<8x128xf32>
    %23 = arith.addf %13, %22 : vector<8x128xf32>
    %24 = arith.mulf %19, %21 : vector<8x128xf32>
    %25 = arith.addf %15, %24 : vector<8x128xf32>
    %26 = arith.mulf %22, %22 : vector<8x128xf32>
    %27 = arith.addf %17, %26 : vector<8x128xf32>
    %28 = arith.index_cast %4 : i32 to index
    %c0_6 = arith.constant 0 : index
    %29 = vector.load %arg5[%28, %c0_6] : memref<8x128xf32, #tpu.memory_space<vmem>>, vector<8x128xf32>
    %30 = arith.addf %29, %23 : vector<8x128xf32>
    %31 = arith.index_cast %4 : i32 to index
    %c0_7 = arith.constant 0 : index
    %32 = vector.load %arg5[%31, %c0_7] : memref<8x128xf32, #tpu.memory_space<vmem>>, vector<8x128xf32>
    tpu.vector_store %arg5[%31, %c0_7], %30 {strides = array<i32>} : memref<8x128xf32, #tpu.memory_space<vmem>>, vector<8x128xf32>,
    %33 = arith.index_cast %4 : i32 to index
    %c0_8 = arith.constant 0 : index
    %34 = vector.load %arg6[%33, %c0_8] : memref<8x128xf32, #tpu.memory_space<vmem>>, vector<8x128xf32>
    %35 = arith.addf %34, %25 : vector<8x128xf32>
    %36 = arith.index_cast %4 : i32 to index
    %c0_9 = arith.constant 0 : index
    %37 = vector.load %arg6[%36, %c0_9] : memref<8x128xf32, #tpu.memory_space<vmem>>, vector<8x128xf32>
    tpu.vector_store %arg6[%36, %c0_9], %35 {strides = array<i32>} : memref<8x128xf32, #tpu.memory_space<vmem>>, vector<8x128xf32>,
    %38 = arith.index_cast %4 : i32 to index
    %c0_10 = arith.constant 0 : index
    %39 = vector.load %arg7[%38, %c0_10] : memref<8x128xf32, #tpu.memory_space<vmem>>, vector<8x128xf32>
    %40 = arith.addf %39, %27 : vector<8x128xf32>
    %41 = arith.index_cast %4 : i32 to index
    %c0_11 = arith.constant 0 : index
    %42 = vector.load %arg7[%41, %c0_11] : memref<8x128xf32, #tpu.memory_space<vmem>>, vector<8x128xf32>
    tpu.vector_store %arg7[%41, %c0_11], %40 {strides = array<i32>} : memref<8x128xf32, #tpu.memory_space<vmem>>, vector<8x128xf32>,
    %c1_i32 = arith.constant 1 : i32
    %c0_i32_12 = arith.constant 0 : i32
    %43 = arith.cmpi eq, %arg1, %c0_i32_12 : i32
    %44 = arith.extui %43 : i1 to i32
    %c0_i32_13 = arith.constant 0 : i32
    %45 = arith.cmpi ne, %44, %c0_i32_13 : i32
    scf.if %45 {
      %c0_14 = arith.constant 0 : index
      %c0_15 = arith.constant 0 : index
      %46 = vector.load %arg5[%c0_14, %c0_15] : memref<8x128xf32, #tpu.memory_space<vmem>>, vector<8x128xf32>
      %cst_16 = arith.constant dense<0.000000e+00> : vector<8xf32>
      %47 = vector.multi_reduction <add>, %46, %cst_16 [1] : vector<8x128xf32> to vector<8xf32>
      %48 = vector.shape_cast %47 : vector<8xf32> to vector<8x1xf32>
      %c0_17 = arith.constant 0 : index
      %c0_18 = arith.constant 0 : index
      %49 = vector.load %arg4[%c0_17, %c0_18] : memref<8x3xf32, #tpu.memory_space<vmem>>, vector<8x1xf32>
      tpu.vector_store %arg4[%c0_17, %c0_18], %48 {strides = array<i32>} : memref<8x3xf32, #tpu.memory_space<vmem>>, vector<8x1xf32>,
      %c0_19 = arith.constant 0 : index
      %c0_20 = arith.constant 0 : index
      %50 = vector.load %arg6[%c0_19, %c0_20] : memref<8x128xf32, #tpu.memory_space<vmem>>, vector<8x128xf32>
      %cst_21 = arith.constant dense<0.000000e+00> : vector<8xf32>
      %51 = vector.multi_reduction <add>, %50, %cst_21 [1] : vector<8x128xf32> to vector<8xf32>
      %52 = vector.shape_cast %51 : vector<8xf32> to vector<8x1xf32>
      %c0_22 = arith.constant 0 : index
      %c1 = arith.constant 1 : index
      %53 = vector.load %arg4[%c0_22, %c1] : memref<8x3xf32, #tpu.memory_space<vmem>>, vector<8x1xf32>
      tpu.vector_store %arg4[%c0_22, %c1], %52 {strides = array<i32>} : memref<8x3xf32, #tpu.memory_space<vmem>>, vector<8x1xf32>,
      %c0_23 = arith.constant 0 : index
      %c0_24 = arith.constant 0 : index
      %54 = vector.load %arg7[%c0_23, %c0_24] : memref<8x128xf32, #tpu.memory_space<vmem>>, vector<8x128xf32>
      %cst_25 = arith.constant dense<0.000000e+00> : vector<8xf32>
      %55 = vector.multi_reduction <add>, %54, %cst_25 [1] : vector<8x128xf32> to vector<8xf32>
      %56 = vector.shape_cast %55 : vector<8xf32> to vector<8x1xf32>
      %c0_26 = arith.constant 0 : index
      %c2 = arith.constant 2 : index
      %57 = vector.load %arg4[%c0_26, %c2] : memref<8x3xf32, #tpu.memory_space<vmem>>, vector<8x1xf32>
      tpu.vector_store %arg4[%c0_26, %c2], %56 {strides = array<i32>} : memref<8x3xf32, #tpu.memory_space<vmem>>, vector<8x1xf32>,
    } else {
    }
    return
  }
  func.func @transform_0(%arg0: i32, %arg1: i32) -> (i32, i32) {
    %c0_i32 = arith.constant 0 : i32
    return %arg0, %arg1 : i32, i32
  }
  func.func @transform_1(%arg0: i32, %arg1: i32) -> (i32, i32) {
    %c0_i32 = arith.constant 0 : i32
    return %arg0, %arg1 : i32, i32
  }
  func.func @transform_2(%arg0: i32, %arg1: i32) -> (i32, i32) {
    %c0_i32 = arith.constant 0 : i32
    %c0_i32_0 = arith.constant 0 : i32
    return %arg0, %c0_i32 : i32, i32
  }
}

</mosaic_0001>

<bundles_post_ra>
// kernel: ftnmt_loss.1
= control target key start
LH: loop header
LB: loop body
LE: loop exit
PB: predicated region body
PF: predicated region fallthrough
CT: control target
= control target key end

     0   :  { %vm54_vm0 = vcmask 7168   ;;  %vm59_vm1 = vcmask 15368   ;;  %vm64_vm2 = vcmask 23568   ;;  %s106_s0 = inlined_call_operand.vmem [shape: f32[8,256], index: 0, kind: input, shape index: {}]   ;;  %s107_s1 = inlined_call_operand.vmem [shape: f32[8,256], index: 1, kind: input, shape index: {}]   ;;  %s108_s2 = inlined_call_operand.vmem [shape: f32[8,3], index: 2, kind: output, shape index: {}]  }
   0x1   :  { %v21_v0 = vld [vmem:[%s106_s0] sm:$0xff]  ;;  %v31_v2 = vld [vmem:[%s106_s0 + $0x8] sm:$0xff] }
   0x2   :  { %v24_v1 = vld [vmem:[%s107_s1] sm:$0xff]  ;;  %v32_v4 = vld [vmem:[%s107_s1 + $0x8] sm:$0xff] }
   0x3   :  { %v25_v3 = vadd.f32 %v24_v1, %v21_v0  ;;  %v33_v5 = vadd.f32 %v32_v4, %v31_v2  ;;  %v27_v6 = vmul.f32 %v24_v1, %v21_v0  ;;  %v35_v7 = vmul.f32 %v32_v4, %v31_v2 }
   0x5   :  { %v29_v8 = vmul.f32 %v25_v3, %v25_v3  ;;  %v34_v9 = vadd.f32 %v33_v5, %v25_v3  ;;  %v37_v10 = vmul.f32 %v33_v5, %v33_v5  ;;  %v36_v11 = vadd.f32 %v35_v7, %v27_v6 }
   0x7   :  { %52 = vadd.xlane.f32.xlu0 %v34_v9  ;;  %v38_v12 = vadd.f32 %v37_v10, %v29_v8 }
   0x9   :  { %62 = vadd.xlane.f32.xlu1 %v38_v12 }
   0xb   :  { %57 = vadd.xlane.f32.xlu0 %v36_v11 }
  0x94   :  { %v53_v13 = vpop.xlane.xlu0 %52 }
  0x95   :  { %55 = vst.msk [vmem:[%s108_s2] sm:$0xff] %vm54_vm0, %v53_v13 }
  0x96   :  { %v63_v14 = vpop.xlane.xlu1 %62 }
  0x98   :  { %v58_v15 = vpop.xlane.xlu0 %57 }
  0x99   :  { %60 = vst.msk [vmem:[%s108_s2] sm:$0xff] %vm59_vm1, %v58_v15 }
  0x9a   :  { %65 = vst.msk [vmem:[%s108_s2] sm:$0xff] %vm64_vm2, %v63_v14 }

</bundles_post_ra>
